<compile_context>
chip_gen: v6e
topology: v6e:2x2x1
jax: 0.10.0
libtpu: 0.0.40
codegen_flags: <defaults>
</compile_context>

<pallas_src>
import functools
import math

import jax
import jax.numpy as jnp
from jax.experimental import pallas as pl
from jax.experimental.pallas import tpu as pltpu

EPS = 1e-5

_FUSED_LIMIT_BYTES = 2 * 1024 * 1024    # slabs up to this stay resident in VMEM
_BLOCK_BYTES_TARGET = 2 * 1024 * 1024   # per-input-block target (streaming)
_ROW_TILE_CAP = 1024                    # rows/block: past the HBM-roofline knee
_STATS_SPLITS = 2                       # leading parallel axis (v7x megacore)


def _round_up(a, b):
    return ((a + b - 1) // b) * b


# ---------------------------------------------------------------------------
# Fused path: whole (N, W) slab resident in VMEM, centered two-pass stats.
# ---------------------------------------------------------------------------
def _bn_fused_kernel(x_ref, gamma_ref, beta_ref, y_ref, *, inv_n):
    x = x_ref[...].astype(jnp.float32)
    mean = jnp.sum(x, axis=0, keepdims=True) * inv_n
    xc = x - mean
    var = jnp.sum(xc * xc, axis=0, keepdims=True) * inv_n          # biased
    scale = jax.lax.rsqrt(var + EPS) * gamma_ref[...].astype(jnp.float32)
    y = xc * scale + beta_ref[...].astype(jnp.float32)
    y_ref[...] = y.astype(y_ref.dtype)


def _bn_fused(x2, gamma, beta):
    n, w = x2.shape
    return pl.pallas_call(
        functools.partial(_bn_fused_kernel, inv_n=1.0 / n),
        out_shape=jax.ShapeDtypeStruct((n, w), x2.dtype),
    )(x2, gamma.reshape(1, w), beta.reshape(1, w))


# ---------------------------------------------------------------------------
# Streaming path, pass 1: per-column sum / sum-of-squares into (8, Wd)
# vreg-shaped accumulators (one pair per leading "split").
# ---------------------------------------------------------------------------
def _bn_stats_kernel(x_ref, sum_ref, sumsq_ref, *, groups):
    i = pl.program_id(1)

    @pl.when(i == 0)
    def _():
        sum_ref[...] = jnp.zeros_like(sum_ref)
        sumsq_ref[...] = jnp.zeros_like(sumsq_ref)

    x = x_ref[...].astype(jnp.float32)             # (row_tile, Wd)
    xg = x.reshape(groups, 8, x.shape[-1])         # layout-preserving row split
    sum_ref[...] += jnp.sum(xg, axis=0)            # pure VPU adds (no per-step XLU)
    sumsq_ref[...] += jnp.sum(xg * xg, axis=0)


# ---------------------------------------------------------------------------
# Streaming path, pass 2: y = x * scale + shift (affine folded into scale/shift).
# ---------------------------------------------------------------------------
def _bn_norm_kernel(x_ref, scale_ref, shift_ref, y_ref):
    x = x_ref[...].astype(jnp.float32)
    y_ref[...] = (x * scale_ref[...] + shift_ref[...]).astype(y_ref.dtype)


def _bn_streaming(x2, gamma, beta):
    n, w = x2.shape
    dtype = x2.dtype
    itemsize = jnp.dtype(dtype).itemsize
    sub = 8 if itemsize >= 4 else (16 if itemsize == 2 else 32)

    # Lane densification: (N, W) -> (N/k, k*W) with k*W a multiple of 128.
    if w % 128 == 0:
        k = 1
    else:
        k = 128 // math.gcd(w, 128)
        if k * w > 512:            # awkward widths: don't blow up the lane dim
            k = 1
    wd = k * w

    # Row tile: as large as a ~2 MiB input block allows, multiple of the dtype
    # sublane count, capped at 1024 rows, and no larger than the data needs.
    max_rows = max(sub, (_BLOCK_BYTES_TARGET // (wd * itemsize)) // sub * sub)
    rows_needed = _round_up(math.ceil(math.ceil(n / k) / _STATS_SPLITS), sub)
    row_tile = max(sub, min(_ROW_TILE_CAP, max_rows, rows_needed))

    tiles_per_split = math.ceil(math.ceil(n / k) / (_STATS_SPLITS * row_tile))
    nd_pad = _STATS_SPLITS * tiles_per_split * row_tile
    n_pad = nd_pad * k
    if n_pad > n:
        # Zero rows contribute nothing to sum/sumsq; mean/var use the true N.
        x2 = jnp.pad(x2, ((0, n_pad - n), (0, 0)))
    xd = x2.reshape(nd_pad, wd)

    # --- pass 1: stats reduction ---------------------------------------------
    csum, csumsq = pl.pallas_call(
        functools.partial(_bn_stats_kernel, groups=row_tile // 8),
        out_shape=(
            jax.ShapeDtypeStruct((_STATS_SPLITS, 8, wd), jnp.float32),
            jax.ShapeDtypeStruct((_STATS_SPLITS, 8, wd), jnp.float32),
        ),
        grid_spec=pltpu.PrefetchScalarGridSpec(
            num_scalar_prefetch=0,
            grid=(_STATS_SPLITS, tiles_per_split),
            in_specs=[
                pl.BlockSpec(
                    (row_tile, wd),
                    lambda c, i: (c * tiles_per_split + i, 0),
                ),
            ],
            out_specs=[
                pl.BlockSpec((None, 8, wd), lambda c, i: (c, 0, 0)),
                pl.BlockSpec((None, 8, wd), lambda c, i: (c, 0, 0)),
            ],
        ),
        compiler_params=pltpu.CompilerParams(
            dimension_semantics=("parallel", "arbitrary")),
    )(xd)

    # --- tiny O(W) finalize in XLA: fold sublane / lane-copy partials and
    #     build the folded affine (scale, shift). ------------------------------
    inv_n = 1.0 / n
    total_sum = csum.reshape(-1, k, w).sum(axis=(0, 1))
    total_sumsq = csumsq.reshape(-1, k, w).sum(axis=(0, 1))
    mean = total_sum * inv_n
    # TODO(synk): E[x^2]-E[x]^2 in f32 can lose precision when |mean| >> std;
    # the fused path uses the centered formula, the streaming path clamps var.
    var = jnp.maximum(total_sumsq * inv_n - mean * mean, 0.0)
    scale = jax.lax.rsqrt(var + EPS) * gamma.astype(jnp.float32)
    shift = beta.astype(jnp.float32) - mean * scale
    scale_d = jnp.tile(scale, k).reshape(1, wd)
    shift_d = jnp.tile(shift, k).reshape(1, wd)

    # --- pass 2: normalize + affine (single FMA per element) -----------------
    n_tiles = _STATS_SPLITS * tiles_per_split
    yd = pl.pallas_call(
        _bn_norm_kernel,
        out_shape=jax.ShapeDtypeStruct((nd_pad, wd), dtype),
        grid_spec=pltpu.PrefetchScalarGridSpec(
            num_scalar_prefetch=0,
            grid=(n_tiles,),
            in_specs=[
                pl.BlockSpec((row_tile, wd), lambda i: (i, 0)),
                pl.BlockSpec((1, wd), lambda i: (0, 0)),
                pl.BlockSpec((1, wd), lambda i: (0, 0)),
            ],
            out_specs=pl.BlockSpec((row_tile, wd), lambda i: (i, 0)),
        ),
        compiler_params=pltpu.CompilerParams(
            dimension_semantics=("parallel",)),
    )(xd, scale_d, shift_d)

    return yd.reshape(n_pad, w)[:n]


def my_batchnorm1d(x, gamma, beta):
    """Training-mode BatchNorm1d over the flattened leading dims of x."""
    w = x.shape[-1]
    x2 = x.reshape(-1, w)
    # TODO(synk): running_mean / running_var momentum updates (nn.BatchNorm1d
    # buffer state) are not part of the forward output tensor; omitted here.
    if x2.size * jnp.dtype(x2.dtype).itemsize <= _FUSED_LIMIT_BYTES:
        y2 = _bn_fused(x2, gamma, beta)
    else:
        y2 = _bn_streaming(x2, gamma, beta)
    return y2.reshape(x.shape)


def _reference(x, gamma, beta):
    w = x.shape[-1]
    x2 = x.reshape(-1, w).astype(jnp.float32)
    mean = jnp.mean(x2, axis=0, keepdims=True)
    var = jnp.mean((x2 - mean) ** 2, axis=0, keepdims=True)  # biased
    y = (x2 - mean) * jax.lax.rsqrt(var + EPS) * gamma.reshape(1, w) \
        + beta.reshape(1, w)
    return y.reshape(x.shape).astype(x.dtype)


if __name__ == "__main__":
    key = jax.random.PRNGKey(0)
    kx, kg, kb = jax.random.split(key, 3)

    W = 32
    gamma = 1.0 + 0.1 * jax.random.normal(kg, (W,), dtype=jnp.float32)
    beta = 0.1 * jax.random.normal(kb, (W,), dtype=jnp.float32)
    # NOTE: PyTorch default init is gamma=1, beta=0; non-trivial values used
    # here to exercise the affine path deterministically.

    configs = [
        (2, 8, W),        # tiny slab -> fused, VMEM-resident path
        (32, 1024, W),    # streaming path, tiles divide exactly
        (1, 40000, W),    # streaming path with zero-row padding
    ]
    for idx, shape in enumerate(configs):
        x = jax.random.normal(jax.random.fold_in(kx, idx), shape,
                              dtype=jnp.float32)
        y = my_batchnorm1d(x, gamma, beta)
        jax.block_until_ready(y)

        y_ref = _reference(x, gamma, beta)
        assert y.shape == x.shape and y.dtype == x.dtype
        assert jnp.allclose(y, y_ref, atol=1e-4, rtol=1e-5), \
            f"mismatch vs reference for shape {shape}"

    print("KERNEL_OK")
</pallas_src>

<mosaic_0001>
module attributes {stable_mosaic.version = 11 : i64} {
  func.func @_bn_fused_kernel(%arg0: memref<16x32xf32, #tpu.memory_space<vmem>>, %arg1: memref<1x32xf32, #tpu.memory_space<vmem>>, %arg2: memref<1x32xf32, #tpu.memory_space<vmem>>, %arg3: memref<16x32xf32, #tpu.memory_space<vmem>>) attributes {dimension_semantics = [], scalar_prefetch = 0 : i64, scratch_operands = 0 : i64, tpu.core_type = #tpu.core_type<tc>} {
    %c0 = arith.constant 0 : index
    %c0_0 = arith.constant 0 : index
    %0 = vector.load %arg0[%c0, %c0_0] : memref<16x32xf32, #tpu.memory_space<vmem>>, vector<16x32xf32>
    %cst = arith.constant dense<0.000000e+00> : vector<32xf32>
    %1 = vector.multi_reduction <add>, %0, %cst [0] : vector<16x32xf32> to vector<32xf32>
    %2 = vector.shape_cast %1 : vector<32xf32> to vector<1x32xf32>
    %cst_1 = arith.constant 6.250000e-02 : f32
    %3 = vector.broadcast %cst_1 : f32 to vector<1x32xf32>
    %4 = arith.mulf %2, %3 : vector<1x32xf32>
    %5 = vector.broadcast %4 : vector<1x32xf32> to vector<16x32xf32>
    %6 = arith.subf %0, %5 : vector<16x32xf32>
    %7 = arith.mulf %6, %6 : vector<16x32xf32>
    %cst_2 = arith.constant dense<0.000000e+00> : vector<32xf32>
    %8 = vector.multi_reduction <add>, %7, %cst_2 [0] : vector<16x32xf32> to vector<32xf32>
    %9 = vector.shape_cast %8 : vector<32xf32> to vector<1x32xf32>
    %cst_3 = arith.constant 6.250000e-02 : f32
    %10 = vector.broadcast %cst_3 : f32 to vector<1x32xf32>
    %11 = arith.mulf %9, %10 : vector<1x32xf32>
    %cst_4 = arith.constant 9.99999974E-6 : f32
    %12 = vector.broadcast %cst_4 : f32 to vector<1x32xf32>
    %13 = arith.addf %11, %12 : vector<1x32xf32>
    %14 = math.rsqrt %13 : vector<1x32xf32>
    %c0_5 = arith.constant 0 : index
    %c0_6 = arith.constant 0 : index
    %15 = vector.load %arg1[%c0_5, %c0_6] : memref<1x32xf32, #tpu.memory_space<vmem>>, vector<1x32xf32>
    %16 = arith.mulf %14, %15 : vector<1x32xf32>
    %17 = vector.broadcast %16 : vector<1x32xf32> to vector<16x32xf32>
    %18 = arith.mulf %6, %17 : vector<16x32xf32>
    %c0_7 = arith.constant 0 : index
    %c0_8 = arith.constant 0 : index
    %19 = vector.load %arg2[%c0_7, %c0_8] : memref<1x32xf32, #tpu.memory_space<vmem>>, vector<1x32xf32>
    %20 = vector.broadcast %19 : vector<1x32xf32> to vector<16x32xf32>
    %21 = arith.addf %18, %20 : vector<16x32xf32>
    %c0_9 = arith.constant 0 : index
    %c0_10 = arith.constant 0 : index
    %22 = vector.load %arg3[%c0_9, %c0_10] : memref<16x32xf32, #tpu.memory_space<vmem>>, vector<16x32xf32>
    tpu.vector_store %arg3[%c0_9, %c0_10], %21 {strides = array<i32>} : memref<16x32xf32, #tpu.memory_space<vmem>>, vector<16x32xf32>,
    return
  }
}

</mosaic_0001>

<bundles_post_ra>
// kernel: tpu_custom_call.1
= control target key start
LH: loop header
LB: loop body
LE: loop exit
PB: predicated region body
PF: predicated region fallthrough
CT: control target
= control target key end

     0   :  { %8 = vsyncpa [#allocation3], 0  ;;  %s193_s0 = inlined_call_operand.hbm [shape: f32[16,32], index: 0, kind: input, shape index: {}]   ;;  %s194_s1 = inlined_call_operand.vmem [shape: f32[1,32], index: 1, kind: input, shape index: {}]   ;;  %s195_s2 = inlined_call_operand.vmem [shape: f32[1,32], index: 2, kind: input, shape index: {}]   ;;  %s196_s3 = inlined_call_operand.hbm [shape: f32[16,32], index: 3, kind: output, shape index: {}]  }
   0x1   :  { %9 = vsyncpa [#allocation4], 0  ;;  %s145_s12 = smov [#allocation2]  }
   0x2   :  { %s15_s13 = sshll.u32 %s145_s12, 4  ;;  %s16_s13 = int_to_ptr.vmem [resolvable:$true] %s15_s13 }
   0x3   :  { %s109_s14 = scalar_lea.vmem %s16_s13, 256  ;;  %p114_p1 = scmp.lt.s32.totalorder %s16_s13, %s16_s13 }
   0x4   :  { %p110_p0 = scmp.ne.s32.totalorder %s16_s13, %s109_s14  ;;  %p115_p2 = scmp.lt.s32.totalorder %s109_s14, %s109_s14 }
   0x6   :  { %p116_p3 = por %p115_p2, %p114_p1 }
   0x8   :  { %p117_p4 = pnand %p116_p3, %p110_p0 }
   0xa   :  { %120 = shalt.err (!%p117_p4)
}
   0xb   :  { %s146_s15 = smov 128   ;;  %s147_s16 = smov 8  }
   0xc   :  { %21 = dma.hbm_to_vmem [thread:$0]  %s193_s0, 256, %s16_s13, [#allocation3], %s146_s15, %s146_s15, %s147_s16  }
   0xd   :  { %141 = dma.done.wait [#allocation3], 256  }
   0xe   :  { %142 = vsyncadd [#allocation3], 4294967040  ;;  %vm31_vm0 = vcmask 261120   ;;  %v29_v0 = vld [vmem:[#allocation2] sm:$0xff]  ;;  %v30_v1 = vld [vmem:[#allocation2 + $0x8] sm:$0xff]  ;;  %v60_v27 = vlaneseq  ;;  %s148_s22 = smov [#allocation5]  }
   0xf   :  { %v32_v2 = vsel %vm31_vm0, %v29_v0, 0.0  ;;  %v33_v3 = vsel %vm31_vm0, %v30_v1, 0.0  ;;  %v58_v29 = vld [vmem:[%s194_s1] sm:$0x1]  ;;  %s82_s23 = sshll.u32 %s148_s22, 4  ;;  %s83_s23 = int_to_ptr.vmem [resolvable:$true] %s82_s23 }
  0x10   :  { %v34_v4 = vadd.f32 %v33_v3, %v32_v2  ;;  %v61_v28 = vshrl.u32 %v60_v27, 7  ;;  %v94_v34 = vld [vmem:[%s195_s2] ss:$0 sm:$0xff]  ;;  %s121_s1 = scalar_lea.vmem %s83_s23, 256  ;;  %p126_p6 = scmp.lt.s32.totalorder %s83_s23, %s83_s23 }
  0x11   :  { %p122_p5 = scmp.ne.s32.totalorder %s83_s23, %s121_s1  ;;  %p127_p7 = scmp.lt.s32.totalorder %s121_s1, %s121_s1 }
  0x12   :  { %v35_v5 = vrot.slane %v34_v4, 4  ;;  %v62_v30 = vsub.s32 0, %v61_v28 }
  0x13   :  { %p128_p8 = por %p127_p7, %p126_p6 }
  0x14   :  { %v36_v6 = vadd.f32 %v35_v5, %v34_v4 }
  0x15   :  { %p129_p9 = pnand %p128_p8, %p122_p5 }
  0x16   :  { %v37_v7 = vrot.slane %v36_v6, 2 }
  0x18   :  { %v38_v8 = vadd.f32 %v37_v7, %v36_v6 }
  0x1a   :  { %v39_v9 = vrot.slane %v38_v8, 1 }
  0x1c   :  { %v40_v10 = vadd.f32 %v39_v9, %v38_v8 }
  0x1e   :  { %v41_v11 = vmul.f32 0.0625, %v40_v10 }
  0x20   :  { %v42_v12 = vsub.f32 %v29_v0, %v41_v11  ;;  %v43_v13 = vsub.f32 %v30_v1, %v41_v11 }
  0x22   :  { %v44_v14 = vmul.f32 %v42_v12, %v42_v12  ;;  %v45_v15 = vmul.f32 %v43_v13, %v43_v13 }
  0x24   :  { %v46_v16 = vsel %vm31_vm0, %v44_v14, 0.0  ;;  %v47_v17 = vsel %vm31_vm0, %v45_v15, 0.0 }
  0x25   :  { %v48_v18 = vadd.f32 %v47_v17, %v46_v16 }
  0x27   :  { %v49_v19 = vrot.slane %v48_v18, 4 }
  0x29   :  { %v50_v20 = vadd.f32 %v49_v19, %v48_v18 }
  0x2b   :  { %v51_v21 = vrot.slane %v50_v20, 2 }
  0x2d   :  { %v52_v22 = vadd.f32 %v51_v21, %v50_v20 }
  0x2f   :  { %v53_v23 = vrot.slane %v52_v22, 1 }
  0x31   :  { %v54_v24 = vadd.f32 %v53_v23, %v52_v22 }
  0x33   :  { %v55_v25 = vmul.f32 0.0625, %v54_v24 }
  0x35   :  { %v56_v26 = vadd.f32 1e-05, %v55_v25 }
  0x37   :  { %99 = vrsqrt.f32 %v56_v26 }
  0x44   :  { %v100_v31 = vpop.eup %99 }
  0x45   :  { %v59_v32 = vmul.f32 %v100_v31, %v58_v29 }
  0x47   :  { %v63_v33 = vrot.slane %v59_v32, %v62_v30 }
  0x49   :  { %v64_v35 = vmul.f32 %v63_v33, %v42_v12  ;;  %v65_v36 = vmul.f32 %v63_v33, %v43_v13 }
  0x4b   :  { %v73_v37 = vadd.f32 %v94_v34, %v64_v35  ;;  %v74_v38 = vadd.f32 %v94_v34, %v65_v36 }
  0x4d   :  { %75 = vst.msk [vmem:[#allocation5] sm:$0xff] %vm31_vm0, %v73_v37  ;;  %76 = vst.msk [vmem:[#allocation5 + $0x8] sm:$0xff] %vm31_vm0, %v74_v38 }
  0x4e   :  { %132 = shalt.err (!%p129_p9)
}
  0x4f   :  { %88 = dma.vmem_to_hbm [thread:$0]  %s83_s23, 256, %s196_s3, [#allocation4], %s146_s15, %s146_s15, %s147_s16  }
  0x50   :  { %143 = dma.done.wait [#allocation4], 256  }
  0x51   :  { %144 = vsyncadd [#allocation4], 4294967040 }
  0x52   :  { %92 = vsyncpa [#allocation3], 1 }
  0x53   :  { %93 = vsyncpa [#allocation4], 1 }

</bundles_post_ra>
